<compile_context>
chip_gen: v7x
topology: tpu7x:2x2x1
jax: 0.10.0
libtpu: 0.0.40
codegen_flags: <defaults>
</compile_context>

<pallas_src>
import jax
import jax.numpy as jnp
from jax.experimental import pallas as pl
from jax.experimental.pallas import tpu as pltpu


def linear_kernel(x_ref, w_ref, b_ref, o_ref):
    # x_ref: (TB, K) VMEM tile (pipelined over the batch grid)
    # w_ref: (N, K)  VMEM, resident across grid steps
    # b_ref: (N,)    SMEM scalars
    # o_ref: (TB, N) VMEM output tile
    x = x_ref[...].astype(jnp.float32)                 # (TB, K)
    n_out = w_ref.shape[0]                             # static (2)
    for j in range(n_out):                             # static unroll over out_features
        wj = w_ref[j:j + 1, :].astype(jnp.float32)     # (1, K) weight row — no transpose
        # VPU elementwise multiply + short (K=5) lane reduce; MXU skipped entirely.
        yj = jnp.sum(x * wj, axis=-1, keepdims=True) + b_ref[j]
        o_ref[:, j:j + 1] = yj.astype(o_ref.dtype)
    # Note: with out_features=2 the store is inherently a masked 2-lane write; a
    # lane-dense (transposed/padded) output layout only pays off at very large B.


def basic_model_forward(x, w, b, *, block_b=512):
    """y = x @ W^T + b, batch-tiled Pallas TPU kernel."""
    B, K = x.shape
    N, K2 = w.shape
    assert K == K2 and b.shape == (N,)

    # Batch tile: a multiple of 8 (sublane) when tiling, otherwise the full batch.
    tb = min(block_b, B)
    if B % tb != 0 or tb % 8 != 0:
        tb = B
    grid = (B // tb,)

    itemsize = x.dtype.itemsize
    flops = 2 * B * K * N
    bytes_accessed = (B * K + N * K + N + B * N) * itemsize

    return pl.pallas_call(
        linear_kernel,
        out_shape=jax.ShapeDtypeStruct((B, N), x.dtype),
        grid=grid,
        in_specs=[
            pl.BlockSpec((tb, K), lambda i: (i, 0)),   # x: pipelined batch tiles
            pl.BlockSpec((N, K), lambda i: (0, 0)),    # W: DMA'd once, VMEM-resident
            pl.BlockSpec(memory_space=pltpu.SMEM),     # bias: 2 scalars in SMEM
        ],
        out_specs=pl.BlockSpec((tb, N), lambda i: (i, 0)),
        compiler_params=pltpu.CompilerParams(
            dimension_semantics=("parallel",),         # shard batch grid across TCs (v7x)
        ),
        cost_estimate=pl.CostEstimate(
            flops=flops, transcendentals=0, bytes_accessed=bytes_accessed),
    )(x, w, b)


if __name__ == "__main__":
    key = jax.random.PRNGKey(0)
    kx, kw, kb = jax.random.split(key, 3)

    in_features, out_features = 5, 2
    batch = 8

    # Deterministic init mimicking PyTorch's U(-1/sqrt(fan_in), 1/sqrt(fan_in))
    bound = 1.0 / jnp.sqrt(jnp.float32(in_features))
    w = jax.random.uniform(kw, (out_features, in_features), jnp.float32, -bound, bound)
    b = jax.random.uniform(kb, (out_features,), jnp.float32, -bound, bound)
    x = jax.random.normal(kx, (batch, in_features), jnp.float32)

    out = basic_model_forward(x, w, b)
    jax.block_until_ready(out)

    # Correctness check against plain-JAX reference
    ref = x @ w.T + b
    assert out.shape == (batch, out_features)
    assert jnp.allclose(out, ref, atol=1e-5, rtol=1e-5)

    print("KERNEL_OK")
</pallas_src>

<mosaic_0001>
module attributes {stable_mosaic.version = 11 : i64} {
  func.func @linear_kernel(%arg0: i32, %arg1: memref<8x5xf32, #tpu.memory_space<vmem>>, %arg2: memref<2x5xf32, #tpu.memory_space<vmem>>, %arg3: memref<2xf32, #tpu.memory_space<smem>>, %arg4: memref<8x2xf32, #tpu.memory_space<vmem>>) attributes {dimension_semantics = [#tpu.dimension_semantics<parallel>], iteration_bounds = array<i64: 1>, scalar_prefetch = 0 : i64, scratch_operands = 0 : i64, tpu.core_type = #tpu.core_type<tc>, window_params = [{transform_indices = @transform_0, window_bounds = array<i64: 8, 5>}, {pipeline_mode = #tpu.pipeline_mode<synchronous>, transform_indices = @transform_1, window_bounds = array<i64: 2, 5>}, {transform_indices = @transform_2, window_bounds = array<i64: 2>}, {transform_indices = @transform_3, window_bounds = array<i64: 8, 2>}]} {
    %c0 = arith.constant 0 : index
    %c0_0 = arith.constant 0 : index
    %0 = vector.load %arg1[%c0, %c0_0] : memref<8x5xf32, #tpu.memory_space<vmem>>, vector<8x5xf32>
    %c0_1 = arith.constant 0 : index
    %c0_2 = arith.constant 0 : index
    %1 = vector.load %arg2[%c0_1, %c0_2] : memref<2x5xf32, #tpu.memory_space<vmem>>, vector<1x5xf32>
    %2 = vector.broadcast %1 : vector<1x5xf32> to vector<8x5xf32>
    %3 = arith.mulf %0, %2 : vector<8x5xf32>
    %cst = arith.constant dense<0.000000e+00> : vector<8xf32>
    %4 = vector.multi_reduction <add>, %3, %cst [1] : vector<8x5xf32> to vector<8xf32>
    %5 = vector.shape_cast %4 : vector<8xf32> to vector<8x1xf32>
    %c0_3 = arith.constant 0 : index
    %6 = memref.load %arg3[%c0_3] : memref<2xf32, #tpu.memory_space<smem>>
    %7 = vector.broadcast %6 : f32 to vector<8x1xf32>
    %8 = arith.addf %5, %7 : vector<8x1xf32>
    %c0_4 = arith.constant 0 : index
    %c0_5 = arith.constant 0 : index
    %9 = vector.load %arg4[%c0_4, %c0_5] : memref<8x2xf32, #tpu.memory_space<vmem>>, vector<8x1xf32>
    tpu.vector_store %arg4[%c0_4, %c0_5], %8 {strides = array<i32>} : memref<8x2xf32, #tpu.memory_space<vmem>>, vector<8x1xf32>,
    %c1 = arith.constant 1 : index
    %c0_6 = arith.constant 0 : index
    %10 = vector.load %arg2[%c1, %c0_6] : memref<2x5xf32, #tpu.memory_space<vmem>>, vector<1x5xf32>
    %11 = vector.broadcast %10 : vector<1x5xf32> to vector<8x5xf32>
    %12 = arith.mulf %0, %11 : vector<8x5xf32>
    %cst_7 = arith.constant dense<0.000000e+00> : vector<8xf32>
    %13 = vector.multi_reduction <add>, %12, %cst_7 [1] : vector<8x5xf32> to vector<8xf32>
    %14 = vector.shape_cast %13 : vector<8xf32> to vector<8x1xf32>
    %c1_8 = arith.constant 1 : index
    %15 = memref.load %arg3[%c1_8] : memref<2xf32, #tpu.memory_space<smem>>
    %16 = vector.broadcast %15 : f32 to vector<8x1xf32>
    %17 = arith.addf %14, %16 : vector<8x1xf32>
    %c0_9 = arith.constant 0 : index
    %c1_10 = arith.constant 1 : index
    %18 = vector.load %arg4[%c0_9, %c1_10] : memref<8x2xf32, #tpu.memory_space<vmem>>, vector<8x1xf32>
    tpu.vector_store %arg4[%c0_9, %c1_10], %17 {strides = array<i32>} : memref<8x2xf32, #tpu.memory_space<vmem>>, vector<8x1xf32>,
    return
  }
  func.func @transform_0(%arg0: i32) -> (i32, i32) {
    %c0_i32 = arith.constant 0 : i32
    %c0_i32_0 = arith.constant 0 : i32
    return %arg0, %c0_i32 : i32, i32
  }
  func.func @transform_1(%arg0: i32) -> (i32, i32) {
    %c0_i32 = arith.constant 0 : i32
    %c0_i32_0 = arith.constant 0 : i32
    %c0_i32_1 = arith.constant 0 : i32
    return %c0_i32, %c0_i32_0 : i32, i32
  }
  func.func @transform_2(%arg0: i32) -> i32 {
    %c0_i32 = arith.constant 0 : i32
    %c0_i32_0 = arith.constant 0 : i32
    return %c0_i32 : i32
  }
  func.func @transform_3(%arg0: i32) -> (i32, i32) {
    %c0_i32 = arith.constant 0 : i32
    %c0_i32_0 = arith.constant 0 : i32
    return %arg0, %c0_i32 : i32, i32
  }
}

</mosaic_0001>

<bundles_post_ra>
// kernel: tpu_custom_call.1
= control target key start
LH: loop header
LB: loop body
LE: loop exit
PB: predicated region body
PF: predicated region fallthrough
CT: control target
= control target key end

     0   :  { %8 = vsyncpa [#allocation3], 0  ;;  %s167_s0 = inlined_call_operand.hbm [shape: f32[8,5], index: 0, kind: input, shape index: {}]   ;;  %s168_s1 = inlined_call_operand.vmem [shape: f32[2,5], index: 1, kind: input, shape index: {}]   ;;  %s169_s2 = inlined_call_operand.vmem [shape: f32[2], index: 2, kind: input, shape index: {}]   ;;  %s170_s3 = inlined_call_operand.vmem [shape: f32[8,2], index: 3, kind: output, shape index: {}]  }
   0x1   :  { %9 = vsyncpa [#allocation4], 0  ;;  %s28_s14 = sshll.u32 %s169_s2, 4  ;;  %s118_s15 = smov [#allocation2]   ;;  %s29_s14 = int_to_ptr.vmem [resolvable:$true] %s28_s14 }
   0x2   :  { %s16_s16 = sshll.u32 %s118_s15, 4  ;;  %s80_s19 = scalar_lea.hbm %s167_s0, 128  ;;  %s17_s16 = int_to_ptr.vmem [resolvable:$true] %s16_s16 }
   0x3   :  { %p81_p0 = scmp.ne.s32.totalorder %s167_s0, %s80_s19  ;;  %p84_p1 = scmp.lt.u32.totalorder %s80_s19, %s167_s0 }
   0x5   :  { %p86_p2 = pnand %p84_p1, %p81_p0 }
   0x7   :  { %89 = shalt.err (!%p86_p2)
}
   0x8   :  { %s90_s24 = scalar_lea.vmem %s17_s16, 128  ;;  %p95_p4 = scmp.lt.s32.totalorder %s17_s16, %s17_s16 }
   0x9   :  { %p91_p3 = scmp.ne.s32.totalorder %s17_s16, %s90_s24  ;;  %p96_p5 = scmp.lt.s32.totalorder %s90_s24, %s90_s24 }
   0xb   :  { %p97_p6 = por %p96_p5, %p95_p4 }
   0xd   :  { %p98_p7 = pnand %p97_p6, %p91_p3 }
   0xf   :  { %101 = shalt.err (!%p98_p7)
}
  0x10   :  { %19 = dma.hbm_to_vmem [thread:$0]  %s167_s0, 128, %s17_s16, [#allocation3]  }
  0x11   :  { %s102_s26 = scalar_lea.vmem %s29_s14, 16  ;;  %p107_p9 = scmp.lt.s32.totalorder %s29_s14, %s29_s14 }
  0x12   :  { %p103_p8 = scmp.ne.s32.totalorder %s29_s14, %s102_s26  ;;  %p108_p10 = scmp.lt.s32.totalorder %s102_s26, %s102_s26 }
  0x14   :  { %p109_p11 = por %p108_p10, %p107_p9 }
  0x16   :  { %p110_p12 = pnand %p109_p11, %p103_p8 }
  0x18   :  { %113 = shalt.err (!%p110_p12)
}
  0x19   :  { %s119_s27 = smov [#allocation5]  }
  0x1a   :  { %31 = dma.vmem_to_smem %s29_s14, 16, %s119_s27, [#allocation4]  }
  0x1b   :  { %114 = dma.done.wait [#allocation3], 128  }
  0x1c   :  { %115 = vsyncadd [#allocation3], 4294967168 }
  0x1d   :  { %116 = dma.done.wait [#allocation4], 16  }
  0x1e   :  { %117 = vsyncadd [#allocation4], 4294967280 }
  0x1f   :  { %38 = sfence }
  0x20   :  { %v39_v0 = vld [vmem:[#allocation2] sm:$0xff]  ;;  %v75_v1 = vld [vmem:[%s168_s1] ss:$0 sm:$0xff]  ;;  %vm46_vm0 = vcmask 39936   ;;  %v76_v2 = vld [vmem:[%s168_s1 + $0x1] ss:$0 sm:$0xff] }
  0x21   :  { %v45_v3 = vmul.f32 %v75_v1, %v39_v0  ;;  %v60_v4 = vmul.f32 %v76_v2, %v39_v0  ;;  %s50_s4 = sld [smem:[#allocation5]]  ;;  %s77_s5 = sld [smem:[#allocation5 + $0x1]]  ;;  %vm53_vm1 = vcmask 7168   ;;  %vm67_vm2 = vcmask 15368  }
  0x23   :  { %v47_v5 = vsel %vm46_vm0, %v45_v3, 0.0  ;;  %v61_v6 = vsel %vm46_vm0, %v60_v4, 0.0 }
  0x24   :  { %48 = vadd.xlane.f32.xlu0 %v47_v5 }
  0x27   :  { %v51_v7 = vstv %s50_s4  ;;  %v65_v10 = vstv %s77_s5 }
  0x28   :  { %62 = vadd.xlane.f32.xlu0 %v61_v6 }
  0xb1   :  { %v49_v8 = vpop.xlane.xlu0 %48 }
  0xb2   :  { %v52_v9 = vadd.f32 %v51_v7, %v49_v8 }
  0xb4   :  { %54 = vst.msk [vmem:[%s170_s3] sm:$0xff] %vm53_vm1, %v52_v9 }
  0xb5   :  { %v63_v11 = vpop.xlane.xlu0 %62 }
  0xb6   :  { %v66_v12 = vadd.f32 %v65_v10, %v63_v11 }
  0xb8   :  { %68 = vst.msk [vmem:[%s170_s3] sm:$0xff] %vm67_vm2, %v66_v12 }
  0xb9   :  { %73 = vsyncpa [#allocation3], 1 }
  0xba   :  { %74 = vsyncpa [#allocation4], 1 }

</bundles_post_ra>
